<compile_context>
chip_gen: v6e
topology: v6e:2x2x1
jax: 0.10.0
libtpu: 0.0.40
codegen_flags: <defaults>
</compile_context>

<pallas_src>
import functools
import warnings

import jax
import jax.numpy as jnp
from jax.experimental import pallas as pl
from jax.experimental.pallas import tpu as pltpu

# Inputs are donated so input_output_aliases actually removes the output HBM
# allocations; if XLA cannot thread a particular donated buffer through, it only
# emits this harmless warning -- silence it to keep runs clean.
warnings.filterwarnings("ignore", message="Some donated buffers were not usable")

NEG_SLOPE = 0.01  # torch.nn.LeakyReLU / F.leaky_relu default


def _leaky(x):
    return jnp.where(x >= 0, x, NEG_SLOPE * x)


def _ceil8(x):
    return (x + 7) // 8 * 8


def _slab_layout(H, G):
    """Row offsets / total rows / width / per-segment shapes of the packed weight slab."""
    seg_shapes = ((G, H), (H, H), (1, H), (H, G), (1, G),
                  (H, H), (G, H), (1, H), (H, H), (1, H))
    offs, row = [], 0
    for r, _ in seg_shapes:
        offs.append(row)
        row += _ceil8(r)                     # keep every segment 8-row (sublane) aligned
    width = max(c for _, c in seg_shapes)    # = max(H, G)
    return tuple(offs), _ceil8(row), width, seg_shapes


def pack_epic_params(params, H, G):
    """Pack the 10 (weight-norm-resolved) tensors into ONE compact [rows, width] f32 slab.

    HOISTED: call once per parameter set, not per forward call.
    """
    offs, rows, width, seg_shapes = _slab_layout(H, G)
    buf = jnp.zeros((rows, width), jnp.float32)
    for off, shp, m in zip(offs, seg_shapes, params):
        assert m.shape == shp, (m.shape, shp)
        buf = buf.at[off:off + m.shape[0], :m.shape[1]].set(m.astype(jnp.float32))
    return buf


def _make_kernel(TB, N, H, G, offs):
    (o_wp1g, o_wp1h, o_bp1, o_wp2, o_bp2,
     o_wr1h, o_wr1g, o_br1, o_wr2, o_br2) = offs
    TBN = TB * N

    def kernel(w_ref, zg_ref, zl_ref, zg_out_ref, zl_out_ref):
        dot = lambda a, b: jnp.dot(a, b, preferred_element_type=jnp.float32)

        # Read-before-write: both aliased inputs are fully materialized as values
        # before any store to the aliased outputs (required by input_output_aliases).
        zg = zg_ref[...]                       # [TB, G]
        zl = zl_ref[...]                       # [TB*N, H]   rows ordered b*N + n

        # Constant 0/1 matrices (cheap VPU iota/compare) expressing the set structure
        # on the MXU without any in-kernel reshape:
        #   P[b, i] = 1 iff local-row i belongs to batch b   (sum-pool over locals)
        #   E = P^T                                          (broadcast glob -> its N locals)
        col = jax.lax.broadcasted_iota(jnp.int32, (TB, TBN), 1)
        row = jax.lax.broadcasted_iota(jnp.int32, (TB, TBN), 0)
        P = jnp.where((col >= row * N) & (col < (row + 1) * N),
                      1.0, 0.0).astype(jnp.float32)             # [TB, TB*N]
        rowe = jax.lax.broadcasted_iota(jnp.int32, (TBN, TB), 0)
        cole = jax.lax.broadcasted_iota(jnp.int32, (TBN, TB), 1)
        E = jnp.where((rowe >= cole * N) & (rowe < (cole + 1) * N),
                      1.0, 0.0).astype(jnp.float32)             # [TB*N, TB]

        # ---- phi_1: leaky(cat([z_glob, sum_n z_loc]) @ W + b) ----
        z_sum = dot(P, zl)                                               # [TB, H]
        h1 = _leaky(dot(zg, w_ref[o_wp1g:o_wp1g + G, :H])
                    + dot(z_sum, w_ref[o_wp1h:o_wp1h + H, :H])
                    + w_ref[o_bp1:o_bp1 + 1, :H])                        # [TB, H]

        # ---- phi_2 + residual on z_glob ----
        zg_new = _leaky(dot(h1, w_ref[o_wp2:o_wp2 + H, :G])
                        + w_ref[o_bp2:o_bp2 + 1, :G] + zg)               # [TB, G]
        zg_out_ref[...] = zg_new.astype(zg_out_ref.dtype)

        # ---- rho_1: leaky(cat([z_loc, broadcast z_glob_new]) @ W + b) ----
        glob = dot(zg_new, w_ref[o_wr1g:o_wr1g + G, :H])                 # [TB, H]
        h2 = _leaky(dot(zl, w_ref[o_wr1h:o_wr1h + H, :H])
                    + dot(E, glob)                                       # glob -> every local
                    + w_ref[o_br1:o_br1 + 1, :H])                        # [TB*N, H]

        # ---- rho_2 + residual on z_loc ----
        zl_new = _leaky(dot(h2, w_ref[o_wr2:o_wr2 + H, :H])
                        + w_ref[o_br2:o_br2 + 1, :H] + zl)               # [TB*N, H]
        zl_out_ref[...] = zl_new.astype(zl_out_ref.dtype)

    return kernel


def make_epic_layer_forward(B, N, H, G, *, max_tile_b=512):
    """Build a jitted forward(w_buf, z_glob, z_loc) -> (z_glob_new, z_loc_new).

    Built ONCE per shape config; per-call work is only the pallas_call itself.
    """
    offs, w_rows, w_width, _ = _slab_layout(H, G)

    # Batch tile: a full-B block is always legal; when tiling, keep it sublane-aligned.
    TB = B if B <= max_tile_b else max(8, (max_tile_b // 8) * 8)
    grid = (pl.cdiv(B, TB),)
    TBN = TB * N
    kernel = _make_kernel(TB, N, H, G, offs)

    per_step_flops = 2 * (TB * TBN * H                    # sum-pool matmul (P)
                          + TB * G * H + TB * H * H       # phi_1
                          + TB * H * G                    # phi_2
                          + TB * G * H + TBN * TB * H     # rho_1 global + broadcast (E)
                          + TBN * H * H + TBN * H * H)    # rho_1 local, rho_2
    cost = pl.CostEstimate(
        flops=per_step_flops * grid[0],
        transcendentals=0,
        bytes_accessed=(w_rows * w_width + 2 * (B * G + B * N * H)) * 4)

    fwd_call = pl.pallas_call(
        kernel,
        out_shape=(jax.ShapeDtypeStruct((B, G), jnp.float32),
                   jax.ShapeDtypeStruct((B * N, H), jnp.float32)),
        grid=grid,
        in_specs=[
            # Constant index_map -> weight slab is DMA'd once and stays VMEM-resident.
            pl.BlockSpec((w_rows, w_width), lambda i: (0, 0)),
            pl.BlockSpec((TB, G), lambda i: (i, 0)),
            pl.BlockSpec((TBN, H), lambda i: (i, 0)),
        ],
        out_specs=(pl.BlockSpec((TB, G), lambda i: (i, 0)),
                   pl.BlockSpec((TBN, H), lambda i: (i, 0))),
        # Outputs reuse the z_glob / z_loc HBM buffers (paired with jit donation below).
        input_output_aliases={1: 0, 2: 1},
        compiler_params=pltpu.CompilerParams(dimension_semantics=("parallel",)),
        cost_estimate=cost,
    )

    @functools.partial(jax.jit, donate_argnums=(1, 2))
    def forward(w_buf, z_glob, z_loc):
        zl2 = z_loc.reshape(B * N, H)          # free metadata reshape inside jit
        zg_new, zl_new = fwd_call(w_buf, z_glob, zl2)
        return zg_new, zl_new.reshape(B, N, H)

    return forward


def weight_norm_params(key, out_dim, in_dim):
    """Deterministic weight_norm(nn.Linear)-style params: returns (W[in,out], b[1,out])."""
    kv, kg, kb = jax.random.split(key, 3)
    v = jax.random.normal(kv, (out_dim, in_dim), jnp.float32) * 0.1
    g = jax.random.uniform(kg, (out_dim,), jnp.float32, 0.5, 1.5)
    w = g[:, None] * v / (jnp.linalg.norm(v, axis=1, keepdims=True) + 1e-12)
    b = jax.random.normal(kb, (1, out_dim), jnp.float32) * 0.1
    return w.T, b  # transpose to [in, out] for x @ W


def epic_layer_reference(z_glob, z_loc, params):
    """Pure-JAX reference mirroring the PyTorch forward (pooling='sum')."""
    (wp1g, wp1h, bp1, wp2, bp2, wr1h, wr1g, br1, wr2, br2) = params
    z_sum = jnp.sum(z_loc, axis=1)
    h1 = _leaky(z_glob @ wp1g + z_sum @ wp1h + bp1)
    zg_new = _leaky(h1 @ wp2 + bp2 + z_glob)
    h2 = _leaky(jnp.einsum('bnh,hk->bnk', z_loc, wr1h)
                + (zg_new @ wr1g)[:, None, :] + br1)
    zl_new = _leaky(jnp.einsum('bnh,hk->bnk', h2, wr2) + br2 + z_loc)
    return zg_new, zl_new


if __name__ == "__main__":
    # Small shapes implied by the module: dim_glob_z=16, dim_hidden_z=32, n_locals=8.
    B, N, H, G = 2, 8, 32, 16

    key = jax.random.PRNGKey(0)
    k_zg, k_zl, k1, k2, k3, k4 = jax.random.split(key, 6)

    z_glob = jax.random.normal(k_zg, (B, G), jnp.float32)
    z_loc = jax.random.normal(k_zl, (B, N, H), jnp.float32)

    # phi_1: Linear(H + G -> H) with weight_norm; cat order is [z_glob, z_sum_pool].
    w_phi1, b_phi1 = weight_norm_params(k1, H, G + H)    # [G+H, H]
    wp1g, wp1h = w_phi1[:G], w_phi1[G:]
    # phi_2: Linear(H -> G)
    wp2, bp2 = weight_norm_params(k2, G, H)
    # rho_1: Linear(H + G -> H); cat order is [z_loc, z_glob2loc]
    w_rho1, b_rho1 = weight_norm_params(k3, H, H + G)    # [H+G, H]
    wr1h, wr1g = w_rho1[:H], w_rho1[H:]
    # rho_2: Linear(H -> H)
    wr2, br2 = weight_norm_params(k4, H, H)

    params = (wp1g, wp1h, b_phi1, wp2, bp2, wr1h, wr1g, b_rho1, wr2, br2)

    # Reference first (the kernel call below donates z_glob / z_loc).
    zg_ref, zl_ref = epic_layer_reference(z_glob, z_loc, params)

    # Hoisted once-per-parameter-set work: pack weights + build the jitted forward.
    w_buf = pack_epic_params(params, H, G)
    epic_forward = make_epic_layer_forward(B, N, H, G)

    zg_out, zl_out = epic_forward(w_buf, z_glob, z_loc)
    jax.block_until_ready((zg_out, zl_out))

    assert zg_out.shape == (B, G) and zl_out.shape == (B, N, H)
    assert jnp.allclose(zg_out, zg_ref, rtol=1e-5, atol=1e-5)
    assert jnp.allclose(zl_out, zl_ref, rtol=1e-5, atol=1e-5)

    print("KERNEL_OK")
</pallas_src>

<mosaic_0001>
module attributes {stable_mosaic.version = 11 : i64} {
  func.func @kernel(%arg0: i32, %arg1: memref<192x32xf32, #tpu.memory_space<vmem>>, %arg2: memref<2x16xf32, #tpu.memory_space<vmem>>, %arg3: memref<16x32xf32, #tpu.memory_space<vmem>>, %arg4: memref<2x16xf32, #tpu.memory_space<vmem>>, %arg5: memref<16x32xf32, #tpu.memory_space<vmem>>) attributes {dimension_semantics = [#tpu.dimension_semantics<parallel>], iteration_bounds = array<i64: 1>, scalar_prefetch = 0 : i64, scratch_operands = 0 : i64, tpu.core_type = #tpu.core_type<tc>, window_params = [{pipeline_mode = #tpu.pipeline_mode<synchronous>, transform_indices = @transform_0, window_bounds = array<i64: 192, 32>}, {transform_indices = @transform_1, window_bounds = array<i64: 2, 16>}, {transform_indices = @transform_2, window_bounds = array<i64: 16, 32>}, {transform_indices = @transform_3, window_bounds = array<i64: 2, 16>}, {transform_indices = @transform_4, window_bounds = array<i64: 16, 32>}]} {
    %c0 = arith.constant 0 : index
    %c0_0 = arith.constant 0 : index
    %0 = vector.load %arg2[%c0, %c0_0] : memref<2x16xf32, #tpu.memory_space<vmem>>, vector<2x16xf32>
    %c0_1 = arith.constant 0 : index
    %c0_2 = arith.constant 0 : index
    %1 = vector.load %arg3[%c0_1, %c0_2] : memref<16x32xf32, #tpu.memory_space<vmem>>, vector<16x32xf32>
    %2 = tpu.iota {dimensions = array<i32: 1>} : vector<2x16xi32>
    %3 = tpu.iota {dimensions = array<i32: 0>} : vector<2x16xi32>
    %c8_i32 = arith.constant 8 : i32
    %4 = vector.broadcast %c8_i32 : i32 to vector<2x16xi32>
    %5 = arith.muli %3, %4 : vector<2x16xi32>
    %6 = arith.cmpi sge, %2, %5 : vector<2x16xi32>
    %c1_i32 = arith.constant 1 : i32
    %7 = vector.broadcast %c1_i32 : i32 to vector<2x16xi32>
    %8 = arith.addi %3, %7 : vector<2x16xi32>
    %c8_i32_3 = arith.constant 8 : i32
    %9 = vector.broadcast %c8_i32_3 : i32 to vector<2x16xi32>
    %10 = arith.muli %8, %9 : vector<2x16xi32>
    %11 = arith.cmpi slt, %2, %10 : vector<2x16xi32>
    %12 = arith.andi %6, %11 : vector<2x16xi1>
    %cst = arith.constant 1.000000e+00 : f32
    %cst_4 = arith.constant 0.000000e+00 : f32
    %13 = vector.broadcast %cst : f32 to vector<2x16xf32>
    %14 = vector.broadcast %cst_4 : f32 to vector<2x16xf32>
    %15 = arith.select %12, %13, %14 : vector<2x16xi1>, vector<2x16xf32>
    %16 = tpu.iota {dimensions = array<i32: 0>} : vector<16x2xi32>
    %17 = tpu.iota {dimensions = array<i32: 1>} : vector<16x2xi32>
    %c8_i32_5 = arith.constant 8 : i32
    %18 = vector.broadcast %c8_i32_5 : i32 to vector<16x2xi32>
    %19 = arith.muli %17, %18 : vector<16x2xi32>
    %20 = arith.cmpi sge, %16, %19 : vector<16x2xi32>
    %c1_i32_6 = arith.constant 1 : i32
    %21 = vector.broadcast %c1_i32_6 : i32 to vector<16x2xi32>
    %22 = arith.addi %17, %21 : vector<16x2xi32>
    %c8_i32_7 = arith.constant 8 : i32
    %23 = vector.broadcast %c8_i32_7 : i32 to vector<16x2xi32>
    %24 = arith.muli %22, %23 : vector<16x2xi32>
    %25 = arith.cmpi slt, %16, %24 : vector<16x2xi32>
    %26 = arith.andi %20, %25 : vector<16x2xi1>
    %cst_8 = arith.constant 1.000000e+00 : f32
    %cst_9 = arith.constant 0.000000e+00 : f32
    %27 = vector.broadcast %cst_8 : f32 to vector<16x2xf32>
    %28 = vector.broadcast %cst_9 : f32 to vector<16x2xf32>
    %29 = arith.select %26, %27, %28 : vector<16x2xi1>, vector<16x2xf32>
    %cst_10 = arith.constant dense<0.000000e+00> : vector<2x32xf32>
    %30 = tpu.matmul %15, %1, %cst_10 {dimension_numbers = #tpu.dot_dimension_numbers<[1], [0], [0], [1], [0, 0, 1, 1], [], []>} : vector<2x16xf32>, vector<16x32xf32>, vector<2x32xf32> -> vector<2x32xf32>
    %c0_11 = arith.constant 0 : index
    %c0_12 = arith.constant 0 : index
    %31 = vector.load %arg1[%c0_11, %c0_12] : memref<192x32xf32, #tpu.memory_space<vmem>>, vector<16x32xf32>
    %cst_13 = arith.constant dense<0.000000e+00> : vector<2x32xf32>
    %32 = tpu.matmul %0, %31, %cst_13 {dimension_numbers = #tpu.dot_dimension_numbers<[1], [0], [0], [1], [0, 0, 1, 1], [], []>} : vector<2x16xf32>, vector<16x32xf32>, vector<2x32xf32> -> vector<2x32xf32>
    %c16 = arith.constant 16 : index
    %c0_14 = arith.constant 0 : index
    %33 = vector.load %arg1[%c16, %c0_14] : memref<192x32xf32, #tpu.memory_space<vmem>>, vector<32x32xf32>
    %cst_15 = arith.constant dense<0.000000e+00> : vector<2x32xf32>
    %34 = tpu.matmul %30, %33, %cst_15 {dimension_numbers = #tpu.dot_dimension_numbers<[1], [0], [0], [1], [0, 0, 1, 1], [], []>} : vector<2x32xf32>, vector<32x32xf32>, vector<2x32xf32> -> vector<2x32xf32>
    %35 = arith.addf %32, %34 : vector<2x32xf32>
    %c48 = arith.constant 48 : index
    %c0_16 = arith.constant 0 : index
    %36 = vector.load %arg1[%c48, %c0_16] : memref<192x32xf32, #tpu.memory_space<vmem>>, vector<1x32xf32>
    %37 = vector.broadcast %36 : vector<1x32xf32> to vector<2x32xf32>
    %38 = arith.addf %35, %37 : vector<2x32xf32>
    %cst_17 = arith.constant 0.000000e+00 : f32
    %39 = vector.broadcast %cst_17 : f32 to vector<2x32xf32>
    %40 = arith.cmpf oge, %38, %39 : vector<2x32xf32>
    %cst_18 = arith.constant 0.00999999977 : f32
    %41 = vector.broadcast %cst_18 : f32 to vector<2x32xf32>
    %42 = arith.mulf %41, %38 : vector<2x32xf32>
    %43 = arith.select %40, %38, %42 : vector<2x32xi1>, vector<2x32xf32>
    %c56 = arith.constant 56 : index
    %c0_19 = arith.constant 0 : index
    %44 = vector.load %arg1[%c56, %c0_19] : memref<192x32xf32, #tpu.memory_space<vmem>>, vector<32x16xf32>
    %cst_20 = arith.constant dense<0.000000e+00> : vector<2x16xf32>
    %45 = tpu.matmul %43, %44, %cst_20 {dimension_numbers = #tpu.dot_dimension_numbers<[1], [0], [0], [1], [0, 0, 1, 1], [], []>} : vector<2x32xf32>, vector<32x16xf32>, vector<2x16xf32> -> vector<2x16xf32>
    %c88 = arith.constant 88 : index
    %c0_21 = arith.constant 0 : index
    %46 = vector.load %arg1[%c88, %c0_21] : memref<192x32xf32, #tpu.memory_space<vmem>>, vector<1x16xf32>
    %47 = vector.broadcast %46 : vector<1x16xf32> to vector<2x16xf32>
    %48 = arith.addf %45, %47 : vector<2x16xf32>
    %49 = arith.addf %48, %0 : vector<2x16xf32>
    %cst_22 = arith.constant 0.000000e+00 : f32
    %50 = vector.broadcast %cst_22 : f32 to vector<2x16xf32>
    %51 = arith.cmpf oge, %49, %50 : vector<2x16xf32>
    %cst_23 = arith.constant 0.00999999977 : f32
    %52 = vector.broadcast %cst_23 : f32 to vector<2x16xf32>
    %53 = arith.mulf %52, %49 : vector<2x16xf32>
    %54 = arith.select %51, %49, %53 : vector<2x16xi1>, vector<2x16xf32>
    %c0_24 = arith.constant 0 : index
    %c0_25 = arith.constant 0 : index
    %55 = vector.load %arg4[%c0_24, %c0_25] : memref<2x16xf32, #tpu.memory_space<vmem>>, vector<2x16xf32>
    tpu.vector_store %arg4[%c0_24, %c0_25], %54 {strides = array<i32>} : memref<2x16xf32, #tpu.memory_space<vmem>>, vector<2x16xf32>,
    %c128 = arith.constant 128 : index
    %c0_26 = arith.constant 0 : index
    %56 = vector.load %arg1[%c128, %c0_26] : memref<192x32xf32, #tpu.memory_space<vmem>>, vector<16x32xf32>
    %cst_27 = arith.constant dense<0.000000e+00> : vector<2x32xf32>
    %57 = tpu.matmul %54, %56, %cst_27 {dimension_numbers = #tpu.dot_dimension_numbers<[1], [0], [0], [1], [0, 0, 1, 1], [], []>} : vector<2x16xf32>, vector<16x32xf32>, vector<2x32xf32> -> vector<2x32xf32>
    %c96 = arith.constant 96 : index
    %c0_28 = arith.constant 0 : index
    %58 = vector.load %arg1[%c96, %c0_28] : memref<192x32xf32, #tpu.memory_space<vmem>>, vector<32x32xf32>
    %cst_29 = arith.constant dense<0.000000e+00> : vector<16x32xf32>
    %59 = tpu.matmul %1, %58, %cst_29 {dimension_numbers = #tpu.dot_dimension_numbers<[1], [0], [0], [1], [0, 0, 1, 1], [], []>} : vector<16x32xf32>, vector<32x32xf32>, vector<16x32xf32> -> vector<16x32xf32>
    %cst_30 = arith.constant dense<0.000000e+00> : vector<16x32xf32>
    %60 = tpu.matmul %29, %57, %cst_30 {dimension_numbers = #tpu.dot_dimension_numbers<[1], [0], [0], [1], [0, 0, 1, 1], [], []>} : vector<16x2xf32>, vector<2x32xf32>, vector<16x32xf32> -> vector<16x32xf32>
    %61 = arith.addf %59, %60 : vector<16x32xf32>
    %c144 = arith.constant 144 : index
    %c0_31 = arith.constant 0 : index
    %62 = vector.load %arg1[%c144, %c0_31] : memref<192x32xf32, #tpu.memory_space<vmem>>, vector<1x32xf32>
    %63 = vector.broadcast %62 : vector<1x32xf32> to vector<16x32xf32>
    %64 = arith.addf %61, %63 : vector<16x32xf32>
    %cst_32 = arith.constant 0.000000e+00 : f32
    %65 = vector.broadcast %cst_32 : f32 to vector<16x32xf32>
    %66 = arith.cmpf oge, %64, %65 : vector<16x32xf32>
    %cst_33 = arith.constant 0.00999999977 : f32
    %67 = vector.broadcast %cst_33 : f32 to vector<16x32xf32>
    %68 = arith.mulf %67, %64 : vector<16x32xf32>
    %69 = arith.select %66, %64, %68 : vector<16x32xi1>, vector<16x32xf32>
    %c152 = arith.constant 152 : index
    %c0_34 = arith.constant 0 : index
    %70 = vector.load %arg1[%c152, %c0_34] : memref<192x32xf32, #tpu.memory_space<vmem>>, vector<32x32xf32>
    %cst_35 = arith.constant dense<0.000000e+00> : vector<16x32xf32>
    %71 = tpu.matmul %69, %70, %cst_35 {dimension_numbers = #tpu.dot_dimension_numbers<[1], [0], [0], [1], [0, 0, 1, 1], [], []>} : vector<16x32xf32>, vector<32x32xf32>, vector<16x32xf32> -> vector<16x32xf32>
    %c184 = arith.constant 184 : index
    %c0_36 = arith.constant 0 : index
    %72 = vector.load %arg1[%c184, %c0_36] : memref<192x32xf32, #tpu.memory_space<vmem>>, vector<1x32xf32>
    %73 = vector.broadcast %72 : vector<1x32xf32> to vector<16x32xf32>
    %74 = arith.addf %71, %73 : vector<16x32xf32>
    %75 = arith.addf %74, %1 : vector<16x32xf32>
    %cst_37 = arith.constant 0.000000e+00 : f32
    %76 = vector.broadcast %cst_37 : f32 to vector<16x32xf32>
    %77 = arith.cmpf oge, %75, %76 : vector<16x32xf32>
    %cst_38 = arith.constant 0.00999999977 : f32
    %78 = vector.broadcast %cst_38 : f32 to vector<16x32xf32>
    %79 = arith.mulf %78, %75 : vector<16x32xf32>
    %80 = arith.select %77, %75, %79 : vector<16x32xi1>, vector<16x32xf32>
    %c0_39 = arith.constant 0 : index
    %c0_40 = arith.constant 0 : index
    %81 = vector.load %arg5[%c0_39, %c0_40] : memref<16x32xf32, #tpu.memory_space<vmem>>, vector<16x32xf32>
    tpu.vector_store %arg5[%c0_39, %c0_40], %80 {strides = array<i32>} : memref<16x32xf32, #tpu.memory_space<vmem>>, vector<16x32xf32>,
    return
  }
  func.func @transform_0(%arg0: i32) -> (i32, i32) {
    %c0_i32 = arith.constant 0 : i32
    %c0_i32_0 = arith.constant 0 : i32
    %c0_i32_1 = arith.constant 0 : i32
    return %c0_i32, %c0_i32_0 : i32, i32
  }
  func.func @transform_1(%arg0: i32) -> (i32, i32) {
    %c0_i32 = arith.constant 0 : i32
    %c0_i32_0 = arith.constant 0 : i32
    return %arg0, %c0_i32 : i32, i32
  }
  func.func @transform_2(%arg0: i32) -> (i32, i32) {
    %c0_i32 = arith.constant 0 : i32
    %c0_i32_0 = arith.constant 0 : i32
    return %arg0, %c0_i32 : i32, i32
  }
  func.func @transform_3(%arg0: i32) -> (i32, i32) {
    %c0_i32 = arith.constant 0 : i32
    %c0_i32_0 = arith.constant 0 : i32
    return %arg0, %c0_i32 : i32, i32
  }
  func.func @transform_4(%arg0: i32) -> (i32, i32) {
    %c0_i32 = arith.constant 0 : i32
    %c0_i32_0 = arith.constant 0 : i32
    return %arg0, %c0_i32 : i32, i32
  }
}

</mosaic_0001>

<bundles_post_ra>
// kernel: forward.1
= control target key start
LH: loop header
LB: loop body
LE: loop exit
PB: predicated region body
PF: predicated region fallthrough
CT: control target
= control target key end

     0   :  { %v19_v0 = vlaneseq  ;;  %v855_v1 = vmov 0.0   ;;  %vm856_vm0 = vmmov 0   ;;  %vm42_vm3 = vcmask 130048   ;;  %s1033_s2 = inlined_call_operand.vmem [shape: f32[16,32], index: 2, kind: input, shape index: {}, may-alias: {2,4}]   ;;  %s1034_s0 = inlined_call_operand.vmem [shape: f32[192,32], index: 0, kind: input, shape index: {}]   ;;  %s1035_s1 = inlined_call_operand.vmem [shape: f32[2,16], index: 1, kind: input, shape index: {}, may-alias: {1,3}]   ;;  %s1036_s3 = inlined_call_operand.vmem [shape: f32[2,16], index: 3, kind: output, shape index: {0}, may-alias: {1,3}]   ;;  %s1037_s4 = inlined_call_operand.vmem [shape: f32[16,32], index: 4, kind: output, shape index: {1}, may-alias: {2,4}]  }
   0x1   :  { %783 = vmatprep.subr.mxu0 %v855_v1  ;;  %v886_v2 = vld [vmem:[%s1033_s2 + $0x8] sm:$0xff]  ;;  %v891_v3 = vld [vmem:[%s1033_s2] sm:$0xff]  ;;  %787 = vmatprep.mubr.msk.f32.mxu0 %vm856_vm0, %v855_v1  ;;  %v119_v10 = vld [vmem:[%s1034_s0 + $0x18] sm:$0xff]  ;;  %vm122_vm5 = vcmask 261120   ;;  %vm364_vm8 = vcmask 123904   ;;  %vm445_vm14 = vcmask 15360  }
   0x2   :  { %v121_v4 = vld [vmem:[%s1034_s0 + $0x28] sm:$0xff]  ;;  %784 = vmatpush3.msra.mxu0 %v886_v2  ;;  %v899_v5 = vand.u32 127, %v19_v0  ;;  %v901_v6 = vshrl.u32 %v19_v0, 7  ;;  %790 = vmatprep.subr.mxu1 %v855_v1  ;;  %v120_v7 = vld [vmem:[%s1034_s0 + $0x20] sm:$0xff]  ;;  %v118_v16 = vld [vmem:[%s1034_s0 + $0x10] sm:$0xff] }
   0x3   :  { %785 = vmatprep.subr.mxu0 %v855_v1  ;;  %791 = vmatpush3.msra.mxu1 %v121_v4  ;;  %v117_v12 = vld [vmem:[%s1034_s0 + $0x8] sm:$0xff]  ;;  %v116_v14 = vld [vmem:[%s1034_s0] sm:$0xff]  ;;  %v281_v21 = vld [vmem:[%s1034_s0 + $0x50] sm:$0xff] }
   0x4   :  { %786 = vmatpush3.msra.mxu0 %v891_v3  ;;  %v23_v8 = vmul.u32 8, %v901_v6  ;;  %v25_v9 = vadd.s32 1, %v901_v6  ;;  %792 = vmatprep.subr.mxu1 %v855_v1  ;;  %v16_v15 = vld [vmem:[%s1035_s1] sm:$0x3]  ;;  %v280_v22 = vld [vmem:[%s1034_s0 + $0x48] sm:$0xff]  ;;  %v278_v24 = vld [vmem:[%s1034_s0 + $0x38] sm:$0xff] }
   0x5   :  { %801 = vmatprep.subr.mxu0 %v855_v1  ;;  %793 = vmatpush3.msra.mxu1 %v120_v7  ;;  %v279_v23 = vld [vmem:[%s1034_s0 + $0x40] sm:$0xff]  ;;  %v736_v26 = vld [vmem:[%s1034_s0 + $0x30] ss:$0 sm:$0xff]  ;;  %v367_v32 = vld [vmem:[%s1034_s0 + $0x88] sm:$0xff]  ;;  %v34_v44 = vadd.s32 1, %v899_v5  ;;  %v31_v45 = vmul.u32 8, %v899_v5 }
   0x6   :  { %vm24_vm1 = vcmp.ge.s32.totalorder %v899_v5, %v23_v8  ;;  %v26_v11 = vmul.u32 8, %v25_v9  ;;  %794 = vmatprep.subr.mxu1 %v855_v1  ;;  %798 = vmatprep.mubr.msk.f32.mxu1 %vm856_vm0, %v855_v1  ;;  %v366_v33 = vld [vmem:[%s1034_s0 + $0x80] sm:$0xff]  ;;  %v444_v34 = vld [vmem:[%s1034_s0 + $0x78] sm:$0xff]  ;;  %v443_v35 = vld [vmem:[%s1034_s0 + $0x70] sm:$0xff]  ;;  %v30_v48 = vadd.s32 8, %v901_v6 }
   0x7   :  { %795 = vmatpush3.msra.mxu1 %v119_v10  ;;  %v442_v36 = vld [vmem:[%s1034_s0 + $0x68] sm:$0xff]  ;;  %v737_v37 = vld [vmem:[%s1034_s0 + $0x58] ss:$0 sm:$0xff]  ;;  %v35_v46 = vmul.u32 8, %v34_v44  ;;  %v441_v47 = vld [vmem:[%s1034_s0 + $0x60] sm:$0xff]  ;;  %vm32_vm9 = vcmp.ge.s32.totalorder %v901_v6, %v31_v45 }
   0x8   :  { %vm27_vm2 = vcmp.lt.s32.totalorder %v899_v5, %v26_v11  ;;  %796 = vmatprep.subr.mxu1 %v855_v1  ;;  %vm33_vm12 = vcmp.ge.s32.totalorder %v30_v48, %v31_v45  ;;  %v628_v53 = vld [vmem:[%s1034_s0 + $0xb0] sm:$0xff]  ;;  %v627_v54 = vld [vmem:[%s1034_s0 + $0xa8] sm:$0xff]  ;;  %v626_v55 = vld [vmem:[%s1034_s0 + $0xa0] sm:$0xff] }
   0x9   :  { %vm28_vm4 = vmand %vm24_vm1, %vm27_vm2  ;;  %797 = vmatpush3.msra.mxu1 %v118_v16  ;;  %vm36_vm10 = vcmp.lt.s32.totalorder %v901_v6, %v35_v46  ;;  %vm37_vm13 = vcmp.lt.s32.totalorder %v30_v48, %v35_v46  ;;  %v625_v56 = vld [vmem:[%s1034_s0 + $0x98] sm:$0xff]  ;;  %v745_v59 = vld [vmem:[%s1034_s0 + $0x90] ss:$0 sm:$0xff] }
   0xa   :  { %v29_v13 = vsel %vm28_vm4, 1.0, %v855_v1  ;;  %819 = vmatprep.subr.mxu1 %v855_v1  ;;  %vm38_vm11 = vmand %vm32_vm9, %vm36_vm10  ;;  %v746_v8 = vld [vmem:[%s1034_s0 + $0xb8] ss:$0 sm:$0xff] }
   0xb   :  { %788 = vmatmul.mubr.msk.f32.vlgmr.msra.gmra.mxu0 %vm42_vm3, %v29_v13  ;;  %v40_v49 = vsel %vm38_vm11, 1.0, %v855_v1  ;;  %vm39_vm15 = vmand %vm33_vm12, %vm37_vm13 }
   0xc   :  { %802 = vmatpush3.msra.mxu0 %v117_v12  ;;  %805 = vmatprep.mubr.msk.f32.mxu0 %vm856_vm0, %v855_v1  ;;  %v41_v51 = vsel %vm39_vm15, 1.0, %v855_v1 }
   0xd   :  { %803 = vmatprep.subr.mxu0 %v855_v1 }
   0xe   :  { %804 = vmatpush3.msra.mxu0 %v116_v14 }
   0xf   :  { %806 = vmatmul.mubr.msk.f32.vlgmr.msra.gmra.mxu0 %vm42_vm3, %v16_v15  ;;  %808 = vmatprep.subr.mxu0 %v855_v1 }
  0x10   :  { %816 = vmatprep.mubr.msk.f32.mxu0 %vm856_vm0, %v855_v1  ;;  %809 = vmatpush3.msra.mxu0 %v281_v21 }
  0x11   :  { %810 = vmatprep.subr.mxu0 %v855_v1 }
  0x12   :  { %811 = vmatpush3.msra.mxu0 %v280_v22 }
  0x13   :  { %812 = vmatprep.subr.mxu0 %v855_v1 }
  0x14   :  { %813 = vmatpush3.msra.mxu0 %v279_v23 }
  0x15   :  { %814 = vmatprep.subr.mxu0 %v855_v1 }
  0x16   :  { %815 = vmatpush3.msra.mxu0 %v278_v24 }
  0x17   :  { %831 = vmatprep.subr.mxu0 %v444_v34 }
  0xcb   :  { %v112_v17 = vpop.f32.mrf.mxu0 }
  0xcc   :  { %799 = vmatmul.mubr.msk.f32.vlgmr.msra.gmra.mxu1 %vm122_vm5, %v112_v17 }
  0xcd   :  { %v789_v18 = vpop.f32.mrf.mxu0  ;;  %823 = vmatprep.mubr.msk.f32.mxu1 %vm856_vm0, %v855_v1  ;;  %820 = vmatpush3.msra.mxu1 %v367_v32  ;;  %vm452_vm0 = vcmask 1041408  }
  0xce   :  { %821 = vmatprep.subr.mxu1 %v855_v1 }
  0xcf   :  { %v265_v19 = vpop.f32.mrf.mxu0  ;;  %822 = vmatpush3.msra.mxu1 %v366_v33 }
  0xd1   :  { %v807_v20 = vpop.f32.mrf.mxu0 }
 0x18c   :  { %v192_v25 = vpop.f32.mrf.mxu1 }
 0x18d   :  { %v266_v27 = vadd.f32 %v265_v19, %v192_v25 }
 0x18e   :  { %v800_v28 = vpop.f32.mrf.mxu1 }
 0x18f   :  { %v274_v29 = vadd.f32 %v736_v26, %v266_v27 }
 0x191   :  { %vm275_vm6 = vcmp.ge.f32.partialorder %v274_v29, 0.0  ;;  %v276_v30 = vmul.f32 0.01, %v274_v29 }
 0x193   :  { %v277_v31 = vsel %vm275_vm6, %v274_v29, %v276_v30 }
 0x194   :  { %817 = vmatmul.mubr.msk.f32.vlgmr.msra.gmra.mxu0 %vm122_vm5, %v277_v31 }
 0x195   :  { %839 = vmatprep.mubr.msk.f32.mxu0 %vm122_vm5, %v891_v3  ;;  %832 = vmatpush3.msra.mxu0 %v444_v34 }
 0x196   :  { %833 = vmatprep.subr.mxu0 %v443_v35 }
 0x197   :  { %834 = vmatpush3.msra.mxu0 %v443_v35 }
 0x198   :  { %835 = vmatprep.subr.mxu0 %v442_v36 }
 0x199   :  { %836 = vmatpush3.msra.mxu0 %v442_v36 }
 0x19a   :  { %837 = vmatprep.subr.mxu0 %v441_v47 }
 0x19b   :  { %838 = vmatpush3.msra.mxu0 %v441_v47 }
 0x19c   :  { %840 = vmatmul.mubr.msk.f32.vlgmr.msra.gmra.mxu0 %vm122_vm5, %v886_v2 }
 0x254   :  { %v356_v38 = vpop.f32.mrf.mxu0 }
 0x255   :  { %v357_v39 = vadd.f32 %v737_v37, %v356_v38 }
 0x256   :  { %v818_v40 = vpop.f32.mrf.mxu0 }
 0x257   :  { %v360_v41 = vadd.f32 %v357_v39, %v16_v15 }
 0x259   :  { %vm361_vm7 = vcmp.ge.f32.partialorder %v360_v41, 0.0  ;;  %v362_v42 = vmul.f32 0.01, %v360_v41 }
 0x25b   :  { %v363_v43 = vsel %vm361_vm7, %v360_v41, %v362_v42 }
 0x25c   :  { %365 = vst.msk [vmem:[%s1036_s3] sm:$0x3] %vm364_vm8, %v363_v43  ;;  %824 = vmatmul.mubr.msk.f32.vlgmr.msra.gmra.mxu1 %vm42_vm3, %v363_v43  ;;  %v841_v57 = vpop.f32.mrf.mxu0 }
 0x25d   :  { %828 = vmatprep.mubr.msk.f32.mxu1 %vm445_vm14, %v40_v49 }
 0x25e   :  { %v603_v62 = vpop.f32.mrf.mxu0 }
 0x31c   :  { %v437_v50 = vpop.f32.mrf.mxu1 }
 0x31d   :  { %826 = vmatprep.subr.msk.mxu1 %vm452_vm0, %v437_v50 }
 0x31e   :  { %v825_v52 = vpop.f32.mrf.mxu1  ;;  %827 = vmatpush3.msk.msra.mxu1 %vm452_vm0, %v437_v50 }
 0x31f   :  { %829 = vmatmul.mubr.msk.f32.vlgmr.msra.gmra.mxu1 %vm445_vm14, %v41_v51  ;;  %842 = vmatprep.subr.mxu1 %v628_v53 }
 0x320   :  { %843 = vmatpush3.msra.mxu1 %v628_v53 }
 0x321   :  { %844 = vmatprep.subr.mxu1 %v627_v54 }
 0x322   :  { %845 = vmatpush3.msra.mxu1 %v627_v54 }
 0x323   :  { %846 = vmatprep.subr.mxu1 %v626_v55 }
 0x324   :  { %847 = vmatpush3.msra.mxu1 %v626_v55 }
 0x325   :  { %848 = vmatprep.subr.mxu1 %v625_v56 }
 0x326   :  { %849 = vmatpush3.msra.mxu1 %v625_v56 }
 0x3df   :  { %v830_v58 = vpop.f32.mrf.mxu1 }
 0x3e0   :  { %v609_v60 = vadd.f32 %v841_v57, %v830_v58 }
 0x3e1   :  { %v522_v61 = vpop.f32.mrf.mxu1 }
 0x3e2   :  { %v618_v63 = vadd.f32 %v745_v59, %v609_v60  ;;  %v604_v0 = vadd.f32 %v603_v62, %v522_v61 }
 0x3e4   :  { %v617_v1 = vadd.f32 %v745_v59, %v604_v0  ;;  %v622_v4 = vmul.f32 0.01, %v618_v63  ;;  %vm620_vm1 = vcmp.ge.f32.partialorder %v618_v63, 0.0 }
 0x3e6   :  { %v621_v5 = vmul.f32 0.01, %v617_v1  ;;  %vm619_vm2 = vcmp.ge.f32.partialorder %v617_v1, 0.0  ;;  %v624_v7 = vsel %vm620_vm1, %v618_v63, %v622_v4 }
 0x3e8   :  { %v623_v6 = vsel %vm619_vm2, %v617_v1, %v621_v5 }
 0x3e9   :  { %850 = vmatprep.mubr.msk.f32.mxu1 %vm122_vm5, %v623_v6 }
 0x3ea   :  { %851 = vmatmul.mubr.msk.f32.vlgmr.msra.gmra.mxu1 %vm122_vm5, %v624_v7 }
 0x4aa   :  { %v852_v9 = vpop.f32.mrf.mxu1 }
 0x4ab   :  { %v712_v10 = vadd.f32 %v852_v9, %v746_v8 }
 0x4ac   :  { %v706_v11 = vpop.f32.mrf.mxu1 }
 0x4ad   :  { %v716_v12 = vadd.f32 %v712_v10, %v886_v2  ;;  %v707_v13 = vadd.f32 %v746_v8, %v706_v11 }
 0x4af   :  { %vm718_vm3 = vcmp.ge.f32.partialorder %v716_v12, 0.0  ;;  %v720_v14 = vmul.f32 0.01, %v716_v12  ;;  %v715_v15 = vadd.f32 %v707_v13, %v891_v3 }
 0x4b1   :  { %v722_v16 = vsel %vm718_vm3, %v716_v12, %v720_v14  ;;  %vm717_vm4 = vcmp.ge.f32.partialorder %v715_v15, 0.0  ;;  %v719_v17 = vmul.f32 0.01, %v715_v15 }
 0x4b2   :  { %724 = vst.msk [vmem:[%s1037_s4 + $0x8] sm:$0xff] %vm122_vm5, %v722_v16 }
 0x4b3   :  { %v721_v18 = vsel %vm717_vm4, %v715_v15, %v719_v17 }
 0x4b4   :  { %723 = vst.msk [vmem:[%s1037_s4] sm:$0xff] %vm122_vm5, %v721_v18 }

</bundles_post_ra>
